<compile_context>
chip_gen: v5e
topology: v5e:2x2
jax: 0.10.0
libtpu: 0.0.40
codegen_flags: <defaults>
</compile_context>

<pallas_src>
import jax
import jax.numpy as jnp
from jax.experimental import pallas as pl
from jax.experimental.pallas import tpu as pltpu


def _round_up(n, m):
    return ((n + m - 1) // m) * m


def _mlp_kernel(x_ref,
                w1_ref, b1_ref,
                w2_ref, b2_ref,
                w3_ref, b3_ref,
                w4_ref, b4_ref,
                o_ref):
    """Fused 4-layer MLP: relu(h @ W + b) x 4.

    bf16 operands on the MXU, f32 accumulation, f32 bias-add + ReLU epilogue,
    activations re-emitted as bf16 between layers.
    """

    def layer(h_bf16, w_ref, b_ref):
        acc = jnp.dot(h_bf16, w_ref[...], preferred_element_type=jnp.float32)
        return jnp.maximum(acc + b_ref[...], 0.0).astype(jnp.bfloat16)

    h = x_ref[...].astype(jnp.bfloat16)          # cast input once
    h = layer(h, w1_ref, b1_ref)
    h = layer(h, w2_ref, b2_ref)
    h = layer(h, w3_ref, b3_ref)
    h = layer(h, w4_ref, b4_ref)
    o_ref[...] = h.astype(o_ref.dtype)           # bf16 HBM writeback


def _pick_batch_tile(batch):
    """Rows-per-grid-step.

    <= 256 rows: one tile (block == full array, no divisibility constraint).
    (256, 1024]: split in two so v7x's 2 TensorCores both get a tile.
    > 1024: cap at 512 rows (multiple of 256-wide MXU; ~1-2 MiB working set,
    comfortably under v7x's 64 MiB scoped VMEM even double-buffered).
    """
    if batch <= 256:
        return batch
    if batch <= 1024:
        return _round_up(pl.cdiv(batch, 2), 8)
    return 512


def net_forward(x, params, n_actions, *, out_dtype=jnp.bfloat16):
    """Forward pass of `Net` as a single fused Pallas call.

    x:         (batch, state_dim) float32 (or bf16)
    params:    dict w1..w4 (bf16, padded, (in, out) layout), b1..b4 (f32, (1, out_pad))
    n_actions: true (unpadded) number of actions; output is sliced to this.
    Returns (batch, n_actions) in `out_dtype` (bf16 by default; within the
    tolerance of the bf16 matmul path and halves the output HBM stream).
    """
    w1, b1 = params["w1"], params["b1"]
    w2, b2 = params["w2"], params["b2"]
    w3, b3 = params["w3"], params["b3"]
    w4, b4 = params["w4"], params["b4"]

    batch, state_dim = x.shape
    d_out_pad = w4.shape[1]                      # padded action dim (multiple of 128)

    batch_tile = _pick_batch_tile(batch)
    padded_batch = _round_up(batch, batch_tile)
    if padded_batch != batch:
        # Rows are independent; pad rows compute garbage that is sliced off.
        x = jnp.pad(x, ((0, padded_batch - batch), (0, 0)))
    grid = (padded_batch // batch_tile,)

    def full_spec(a):
        # Constant index_map across the grid -> weight/bias stays VMEM-resident.
        return pl.BlockSpec(a.shape, lambda i: (0, 0))

    out_padded = pl.pallas_call(
        _mlp_kernel,
        out_shape=jax.ShapeDtypeStruct((padded_batch, d_out_pad), out_dtype),
        grid=grid,
        in_specs=[
            pl.BlockSpec((batch_tile, state_dim), lambda i: (i, 0)),
            full_spec(w1), full_spec(b1),
            full_spec(w2), full_spec(b2),
            full_spec(w3), full_spec(b3),
            full_spec(w4), full_spec(b4),
        ],
        out_specs=pl.BlockSpec((batch_tile, d_out_pad), lambda i: (i, 0)),
        compiler_params=pltpu.CompilerParams(
            dimension_semantics=("parallel",)),
    )(x, w1, b1, w2, b2, w3, b3, w4, b4)

    return out_padded[:batch, :n_actions]


def init_params(key, state_dim, n_actions):
    """Params mirroring the PyTorch module, pre-padded & pre-cast for the kernel.

    Weights ~ Normal(0, 0.1) (as in Net.__init__), biases ~ U(+-1/sqrt(fan_in))
    (PyTorch Linear default).  Stored as (in_dim, out_dim) = PyTorch weight
    transposed, zero-padded so every out dim is a multiple of 128, weights cast
    to bf16, biases kept f32.  Zero padding makes the padded output columns
    exactly 0 after ReLU, so they contribute nothing downstream.
    state_dim (layer-1 K dim) is left unpadded: it equals the full array dim so
    the BlockSpec is legal, and per-call x padding would cost more than the ~8%
    of flops layer 1 represents.
    """
    actual_dims = [(state_dim, 500), (500, 250), (250, 120), (120, n_actions)]
    params = {}
    for i, (fan_in, fan_out) in enumerate(actual_dims, start=1):
        key, kw, kb = jax.random.split(key, 3)
        pad_in = state_dim if i == 1 else _round_up(fan_in, 128)
        pad_out = _round_up(fan_out, 128)

        w = 0.1 * jax.random.normal(kw, (fan_in, fan_out), dtype=jnp.float32)
        bound = 1.0 / (float(fan_in) ** 0.5)
        b = jax.random.uniform(kb, (1, fan_out), dtype=jnp.float32,
                               minval=-bound, maxval=bound)

        w_pad = jnp.zeros((pad_in, pad_out), jnp.float32).at[:fan_in, :fan_out].set(w)
        b_pad = jnp.zeros((1, pad_out), jnp.float32).at[:, :fan_out].set(b)

        params[f"w{i}"] = w_pad.astype(jnp.bfloat16)   # bf16 weights, half the DMA
        params[f"b{i}"] = b_pad                         # f32 bias (f32 epilogue)
    return params


def _reference(x, params, n_actions, out_dtype=jnp.bfloat16):
    """Pure-JAX reference with the same numerics (bf16 operands, f32 acc)."""
    h = x.astype(jnp.bfloat16)
    for i in range(1, 5):
        acc = jnp.dot(h, params[f"w{i}"], preferred_element_type=jnp.float32)
        h = jnp.maximum(acc + params[f"b{i}"], 0.0).astype(jnp.bfloat16)
    return h[:, :n_actions].astype(out_dtype)


if __name__ == "__main__":
    key = jax.random.PRNGKey(0)

    state_dim = 32
    n_actions = 4

    key, kp = jax.random.split(key)
    params = init_params(kp, state_dim, n_actions)

    def check(batch, key):
        kx, key = jax.random.split(key)
        x = jax.random.normal(kx, (batch, state_dim), dtype=jnp.float32)
        out = jax.block_until_ready(net_forward(x, params, n_actions))
        expected = _reference(x, params, n_actions)
        assert out.shape == (batch, n_actions), out.shape
        assert jnp.allclose(out.astype(jnp.float32), expected.astype(jnp.float32),
                            atol=5e-2, rtol=2e-2)
        return key

    # Small-batch RL path (single tile, grid of 1).
    key = check(8, key)
    # Larger, non-multiple batch: exercises wrapper pad + 2-tile "parallel" grid.
    key = check(500, key)

    print("KERNEL_OK")
</pallas_src>

<mosaic_0001>
module attributes {stable_mosaic.version = 11 : i64} {
  func.func @_mlp_kernel(%arg0: i32, %arg1: memref<8x32xf32, #tpu.memory_space<vmem>>, %arg2: memref<32x512xbf16, #tpu.memory_space<vmem>>, %arg3: memref<1x512xf32, #tpu.memory_space<vmem>>, %arg4: memref<512x256xbf16, #tpu.memory_space<vmem>>, %arg5: memref<1x256xf32, #tpu.memory_space<vmem>>, %arg6: memref<256x128xbf16, #tpu.memory_space<vmem>>, %arg7: memref<1x128xf32, #tpu.memory_space<vmem>>, %arg8: memref<128x128xbf16, #tpu.memory_space<vmem>>, %arg9: memref<1x128xf32, #tpu.memory_space<vmem>>, %arg10: memref<8x128xbf16, #tpu.memory_space<vmem>>) attributes {dimension_semantics = [#tpu.dimension_semantics<parallel>], iteration_bounds = array<i64: 1>, scalar_prefetch = 0 : i64, scratch_operands = 0 : i64, tpu.core_type = #tpu.core_type<tc>, window_params = [{transform_indices = @transform_0, window_bounds = array<i64: 8, 32>}, {pipeline_mode = #tpu.pipeline_mode<synchronous>, transform_indices = @transform_1, window_bounds = array<i64: 32, 512>}, {pipeline_mode = #tpu.pipeline_mode<synchronous>, transform_indices = @transform_2, window_bounds = array<i64: 1, 512>}, {pipeline_mode = #tpu.pipeline_mode<synchronous>, transform_indices = @transform_3, window_bounds = array<i64: 512, 256>}, {pipeline_mode = #tpu.pipeline_mode<synchronous>, transform_indices = @transform_4, window_bounds = array<i64: 1, 256>}, {pipeline_mode = #tpu.pipeline_mode<synchronous>, transform_indices = @transform_5, window_bounds = array<i64: 256, 128>}, {pipeline_mode = #tpu.pipeline_mode<synchronous>, transform_indices = @transform_6, window_bounds = array<i64: 1, 128>}, {pipeline_mode = #tpu.pipeline_mode<synchronous>, transform_indices = @transform_7, window_bounds = array<i64: 128, 128>}, {pipeline_mode = #tpu.pipeline_mode<synchronous>, transform_indices = @transform_8, window_bounds = array<i64: 1, 128>}, {transform_indices = @transform_9, window_bounds = array<i64: 8, 128>}]} {
    %c0 = arith.constant 0 : index
    %c0_0 = arith.constant 0 : index
    %0 = vector.load %arg1[%c0, %c0_0] : memref<8x32xf32, #tpu.memory_space<vmem>>, vector<8x32xf32>
    %1 = arith.truncf %0 : vector<8x32xf32> to vector<8x32xbf16>
    %c0_1 = arith.constant 0 : index
    %c0_2 = arith.constant 0 : index
    %2 = vector.load %arg2[%c0_1, %c0_2] : memref<32x512xbf16, #tpu.memory_space<vmem>>, vector<32x512xbf16>
    %cst = arith.constant dense<0.000000e+00> : vector<8x512xf32>
    %3 = tpu.matmul %1, %2, %cst {dimension_numbers = #tpu.dot_dimension_numbers<[1], [0], [0], [1], [0, 0, 1, 1], [], []>} : vector<8x32xbf16>, vector<32x512xbf16>, vector<8x512xf32> -> vector<8x512xf32>
    %c0_3 = arith.constant 0 : index
    %c0_4 = arith.constant 0 : index
    %4 = vector.load %arg3[%c0_3, %c0_4] : memref<1x512xf32, #tpu.memory_space<vmem>>, vector<1x512xf32>
    %5 = vector.broadcast %4 : vector<1x512xf32> to vector<8x512xf32>
    %6 = arith.addf %3, %5 : vector<8x512xf32>
    %cst_5 = arith.constant 0.000000e+00 : f32
    %7 = vector.broadcast %cst_5 : f32 to vector<8x512xf32>
    %8 = arith.maximumf %6, %7 : vector<8x512xf32>
    %9 = arith.truncf %8 : vector<8x512xf32> to vector<8x512xbf16>
    %c0_6 = arith.constant 0 : index
    %c0_7 = arith.constant 0 : index
    %10 = vector.load %arg4[%c0_6, %c0_7] : memref<512x256xbf16, #tpu.memory_space<vmem>>, vector<512x256xbf16>
    %cst_8 = arith.constant dense<0.000000e+00> : vector<8x256xf32>
    %11 = tpu.matmul %9, %10, %cst_8 {dimension_numbers = #tpu.dot_dimension_numbers<[1], [0], [0], [1], [0, 0, 1, 1], [], []>} : vector<8x512xbf16>, vector<512x256xbf16>, vector<8x256xf32> -> vector<8x256xf32>
    %c0_9 = arith.constant 0 : index
    %c0_10 = arith.constant 0 : index
    %12 = vector.load %arg5[%c0_9, %c0_10] : memref<1x256xf32, #tpu.memory_space<vmem>>, vector<1x256xf32>
    %13 = vector.broadcast %12 : vector<1x256xf32> to vector<8x256xf32>
    %14 = arith.addf %11, %13 : vector<8x256xf32>
    %cst_11 = arith.constant 0.000000e+00 : f32
    %15 = vector.broadcast %cst_11 : f32 to vector<8x256xf32>
    %16 = arith.maximumf %14, %15 : vector<8x256xf32>
    %17 = arith.truncf %16 : vector<8x256xf32> to vector<8x256xbf16>
    %c0_12 = arith.constant 0 : index
    %c0_13 = arith.constant 0 : index
    %18 = vector.load %arg6[%c0_12, %c0_13] : memref<256x128xbf16, #tpu.memory_space<vmem>>, vector<256x128xbf16>
    %cst_14 = arith.constant dense<0.000000e+00> : vector<8x128xf32>
    %19 = tpu.matmul %17, %18, %cst_14 {dimension_numbers = #tpu.dot_dimension_numbers<[1], [0], [0], [1], [0, 0, 1, 1], [], []>} : vector<8x256xbf16>, vector<256x128xbf16>, vector<8x128xf32> -> vector<8x128xf32>
    %c0_15 = arith.constant 0 : index
    %c0_16 = arith.constant 0 : index
    %20 = vector.load %arg7[%c0_15, %c0_16] : memref<1x128xf32, #tpu.memory_space<vmem>>, vector<1x128xf32>
    %21 = vector.broadcast %20 : vector<1x128xf32> to vector<8x128xf32>
    %22 = arith.addf %19, %21 : vector<8x128xf32>
    %cst_17 = arith.constant 0.000000e+00 : f32
    %23 = vector.broadcast %cst_17 : f32 to vector<8x128xf32>
    %24 = arith.maximumf %22, %23 : vector<8x128xf32>
    %25 = arith.truncf %24 : vector<8x128xf32> to vector<8x128xbf16>
    %c0_18 = arith.constant 0 : index
    %c0_19 = arith.constant 0 : index
    %26 = vector.load %arg8[%c0_18, %c0_19] : memref<128x128xbf16, #tpu.memory_space<vmem>>, vector<128x128xbf16>
    %cst_20 = arith.constant dense<0.000000e+00> : vector<8x128xf32>
    %27 = tpu.matmul %25, %26, %cst_20 {dimension_numbers = #tpu.dot_dimension_numbers<[1], [0], [0], [1], [0, 0, 1, 1], [], []>} : vector<8x128xbf16>, vector<128x128xbf16>, vector<8x128xf32> -> vector<8x128xf32>
    %c0_21 = arith.constant 0 : index
    %c0_22 = arith.constant 0 : index
    %28 = vector.load %arg9[%c0_21, %c0_22] : memref<1x128xf32, #tpu.memory_space<vmem>>, vector<1x128xf32>
    %29 = vector.broadcast %28 : vector<1x128xf32> to vector<8x128xf32>
    %30 = arith.addf %27, %29 : vector<8x128xf32>
    %cst_23 = arith.constant 0.000000e+00 : f32
    %31 = vector.broadcast %cst_23 : f32 to vector<8x128xf32>
    %32 = arith.maximumf %30, %31 : vector<8x128xf32>
    %33 = arith.truncf %32 : vector<8x128xf32> to vector<8x128xbf16>
    %c0_24 = arith.constant 0 : index
    %c0_25 = arith.constant 0 : index
    %34 = vector.load %arg10[%c0_24, %c0_25] : memref<8x128xbf16, #tpu.memory_space<vmem>>, vector<8x128xbf16>
    tpu.vector_store %arg10[%c0_24, %c0_25], %33 {strides = array<i32>} : memref<8x128xbf16, #tpu.memory_space<vmem>>, vector<8x128xbf16>,
    return
  }
  func.func @transform_0(%arg0: i32) -> (i32, i32) {
    %c0_i32 = arith.constant 0 : i32
    %c0_i32_0 = arith.constant 0 : i32
    return %arg0, %c0_i32 : i32, i32
  }
  func.func @transform_1(%arg0: i32) -> (i32, i32) {
    %c0_i32 = arith.constant 0 : i32
    %c0_i32_0 = arith.constant 0 : i32
    %c0_i32_1 = arith.constant 0 : i32
    return %c0_i32, %c0_i32_0 : i32, i32
  }
  func.func @transform_2(%arg0: i32) -> (i32, i32) {
    %c0_i32 = arith.constant 0 : i32
    %c0_i32_0 = arith.constant 0 : i32
    %c0_i32_1 = arith.constant 0 : i32
    return %c0_i32, %c0_i32_0 : i32, i32
  }
  func.func @transform_3(%arg0: i32) -> (i32, i32) {
    %c0_i32 = arith.constant 0 : i32
    %c0_i32_0 = arith.constant 0 : i32
    %c0_i32_1 = arith.constant 0 : i32
    return %c0_i32, %c0_i32_0 : i32, i32
  }
  func.func @transform_4(%arg0: i32) -> (i32, i32) {
    %c0_i32 = arith.constant 0 : i32
    %c0_i32_0 = arith.constant 0 : i32
    %c0_i32_1 = arith.constant 0 : i32
    return %c0_i32, %c0_i32_0 : i32, i32
  }
  func.func @transform_5(%arg0: i32) -> (i32, i32) {
    %c0_i32 = arith.constant 0 : i32
    %c0_i32_0 = arith.constant 0 : i32
    %c0_i32_1 = arith.constant 0 : i32
    return %c0_i32, %c0_i32_0 : i32, i32
  }
  func.func @transform_6(%arg0: i32) -> (i32, i32) {
    %c0_i32 = arith.constant 0 : i32
    %c0_i32_0 = arith.constant 0 : i32
    %c0_i32_1 = arith.constant 0 : i32
    return %c0_i32, %c0_i32_0 : i32, i32
  }
  func.func @transform_7(%arg0: i32) -> (i32, i32) {
    %c0_i32 = arith.constant 0 : i32
    %c0_i32_0 = arith.constant 0 : i32
    %c0_i32_1 = arith.constant 0 : i32
    return %c0_i32, %c0_i32_0 : i32, i32
  }
  func.func @transform_8(%arg0: i32) -> (i32, i32) {
    %c0_i32 = arith.constant 0 : i32
    %c0_i32_0 = arith.constant 0 : i32
    %c0_i32_1 = arith.constant 0 : i32
    return %c0_i32, %c0_i32_0 : i32, i32
  }
  func.func @transform_9(%arg0: i32) -> (i32, i32) {
    %c0_i32 = arith.constant 0 : i32
    %c0_i32_0 = arith.constant 0 : i32
    return %arg0, %c0_i32 : i32, i32
  }
}

</mosaic_0001>

<bundles_post_ra>
// kernel: tpu_custom_call.1
= control target key start
LH: loop header
LB: loop body
LE: loop exit
PB: predicated region body
PF: predicated region fallthrough
CT: control target
= control target key end

     0   :  { %14 = vsyncpa [#allocation3], 0  ;;  %s1790_s0 = inlined_call_operand.hbm [shape: f32[8,32], index: 0, kind: input, shape index: {}]   ;;  %s1791_s1 = inlined_call_operand.hbm [shape: bf16[32,512], index: 1, kind: input, shape index: {}]   ;;  %s1792_s2 = inlined_call_operand.hbm [shape: f32[1,512], index: 2, kind: input, shape index: {}]   ;;  %s1793_s3 = inlined_call_operand.hbm [shape: bf16[512,256], index: 3, kind: input, shape index: {}]   ;;  %s1794_s4 = inlined_call_operand.vmem [shape: f32[1,256], index: 4, kind: input, shape index: {}]   ;;  %s1795_s5 = inlined_call_operand.hbm [shape: bf16[256,128], index: 5, kind: input, shape index: {}]   ;;  %s1796_s6 = inlined_call_operand.vmem [shape: f32[1,128], index: 6, kind: input, shape index: {}]   ;;  %s1797_s7 = inlined_call_operand.hbm [shape: bf16[128,128], index: 7, kind: input, shape index: {}]   ;;  %s1798_s8 = inlined_call_operand.vmem [shape: f32[1,128], index: 8, kind: input, shape index: {}]   ;;  %s1799_s9 = inlined_call_operand.hbm [shape: bf16[8,128], index: 9, kind: output, shape index: {}]  }
   0x1   :  { %15 = vsyncpa [#allocation6], 0 }
   0x2   :  { %16 = vsyncpa [#allocation9], 0 }
   0x3   :  { %17 = vsyncpa [#allocation12], 0  ;;  %s34_s11 = sshll.u32 %s1791_s1, 4  ;;  %s35_s11 = int_to_ptr.hbm [resolvable:$true] %s34_s11 }
   0x4   :  { %18 = vsyncpa [#allocation4], 0  ;;  %s1687_s12 = smov [#allocation5]   ;;  %s58_s16 = sshll.u32 %s1793_s3, 4  ;;  %s59_s16 = int_to_ptr.hbm [resolvable:$true] %s58_s16 }
   0x5   :  { %s36_s13 = sshll.u32 %s1687_s12, 4  ;;  %s1688_s17 = smov 256   ;;  %s37_s13 = int_to_ptr.vmem [resolvable:$true] %s36_s13 }
   0x6   :  { %s1689_s18 = smov 16   ;;  %s1690_s19 = smov [#allocation8]  }
   0x7   :  { %42 = dma.hbm_to_vmem [thread:$0]  %s35_s11, 1024, %s37_s13, [#allocation6], %s1688_s17, %s1688_s17, %s1689_s18  }
   0x8   :  { %s60_s20 = sshll.u32 %s1690_s19, 4  ;;  %s1691_s21 = smov 128   ;;  %s61_s20 = int_to_ptr.vmem [resolvable:$true] %s60_s20 }
   0x9   :  { %s1692_s22 = smov 8   ;;  %s24_s24 = sshll.u32 %s1790_s0, 4  ;;  %s25_s24 = int_to_ptr.hbm [resolvable:$true] %s24_s24 }
   0xa   :  { %66 = dma.hbm_to_vmem [thread:$0]  %s59_s16, 8192, %s61_s20, [#allocation9], %s1691_s21, %s1691_s21, %s1692_s22  }
   0xb   :  { %s1693_s25 = smov [#allocation2]   ;;  %s48_s28 = sshll.u32 %s1792_s2, 4  ;;  %s49_s28 = int_to_ptr.hbm [resolvable:$true] %s48_s28 }
   0xc   :  { %s26_s26 = sshll.u32 %s1693_s25, 4  ;;  %s1694_s29 = smov [#allocation7]   ;;  %s27_s26 = int_to_ptr.vmem [resolvable:$true] %s26_s26 }
   0xd   :  { %29 = dma.hbm_to_vmem [thread:$0]  %s25_s24, 128, %s27_s26, [#allocation3]  }
   0xe   :  { %s50_s30 = sshll.u32 %s1694_s29, 4  ;;  %s73_s12 = sshll.u32 %s1795_s5, 4  ;;  %s51_s30 = int_to_ptr.vmem [resolvable:$true] %s50_s30  ;;  %s74_s12 = int_to_ptr.hbm [resolvable:$true] %s73_s12 }
   0xf   :  { %53 = dma.hbm_to_vmem [thread:$0]  %s49_s28, 64, %s51_s30, [#allocation6]  }
  0x10   :  { %s1695_s0 = smov [#allocation10]   ;;  %s88_s16 = sshll.u32 %s1797_s7, 4  ;;  %s89_s16 = int_to_ptr.hbm [resolvable:$true] %s88_s16 }
  0x11   :  { %s75_s13 = sshll.u32 %s1695_s0, 4  ;;  %s1696_s17 = smov 64   ;;  %s76_s13 = int_to_ptr.vmem [resolvable:$true] %s75_s13 }
  0x12   :  { %s1697_s2 = smov 4   ;;  %s1698_s18 = smov [#allocation11]  }
  0x13   :  { %81 = dma.hbm_to_vmem [thread:$0]  %s74_s12, 2048, %s76_s13, [#allocation9], %s1696_s17, %s1696_s17, %s1697_s2  }
  0x14   :  { %s90_s19 = sshll.u32 %s1698_s18, 4  ;;  %s91_s19 = int_to_ptr.vmem [resolvable:$true] %s90_s19 }
  0x15   :  { %96 = dma.hbm_to_vmem [thread:$0]  %s89_s16, 1024, %s91_s19, [#allocation12], %s1696_s17, %s1696_s17, %s1697_s2  }
  0x16   :  { %1677 = dma.done.wait [#allocation3], 128  }
  0x17   :  { %1678 = vsyncadd [#allocation3], 4294967168 }
  0x18   :  { %1679 = dma.done.wait [#allocation6], 1088  }
  0x19   :  { %1680 = vsyncadd [#allocation6], 4294966208 }
  0x1a   :  { %1681 = dma.done.wait [#allocation9], 10240  }
  0x1b   :  { %1682 = vsyncadd [#allocation9], 4294957056 }
  0x1c   :  { %1683 = dma.done.wait [#allocation12], 1024  }
  0x1d   :  { %1684 = vsyncadd [#allocation12], 4294966272  ;;  %v1028_v0 = vld [vmem:[#allocation5 + $0x20] sm:$0xf]  ;;  %v1404_v1 = vld [vmem:[#allocation5 + $0x2c] sm:$0xf0] }
  0x1e   :  { %v1402_v2 = vld [vmem:[#allocation5 + $0x24] sm:$0xf]  ;;  %v1029_v3 = vor.u32 %v1404_v1, %v1028_v0  ;;  %v1030_v4 = vld [vmem:[#allocation5 + $0x30] sm:$0xf0]  ;;  %v1036_v5 = vld [vmem:[#allocation5 + $0x28] sm:$0xf] }
  0x1f   :  { %v1405_v6 = vld [vmem:[#allocation5 + $0x34] sm:$0xf0]  ;;  %v1033_v7 = vor.u32 %v1402_v2, %v1030_v4  ;;  %v1012_v9 = vld [vmem:[#allocation5] sm:$0xf]  ;;  %v1400_v10 = vld [vmem:[#allocation5 + $0xc] sm:$0xf0] }
  0x20   :  { %v1037_v8 = vor.u32 %v1405_v6, %v1036_v5  ;;  %v1398_v11 = vld [vmem:[#allocation5 + $0x4] sm:$0xf]  ;;  %194 = vmatpush.bf16.msra.mxu3 %v1029_v3  ;;  %v1013_v12 = vor.u32 %v1400_v10, %v1012_v9  ;;  %v1014_v13 = vld [vmem:[#allocation5 + $0x10] sm:$0xf0]  ;;  %v1020_v14 = vld [vmem:[#allocation5 + $0x8] sm:$0xf] }
  0x21   :  { %v1401_v15 = vld [vmem:[#allocation5 + $0x14] sm:$0xf0]  ;;  %207 = vmatpush.bf16.msra.mxu1 %v1033_v7  ;;  %v1017_v16 = vor.u32 %v1398_v11, %v1014_v13  ;;  %vm184_vm0 = vcmask 261120   ;;  %v1403_v19 = vld [vmem:[#allocation5 + $0x2c] sm:$0xf]  ;;  %s1699_s1 = smov [#allocation13]  }
  0x22   :  { %220 = vmatpush.bf16.msra.mxu2 %v1037_v8  ;;  %v1021_v17 = vor.u32 %v1401_v15, %v1020_v14  ;;  %v124_v18 = vld [vmem:[#allocation2] sm:$0xff]  ;;  %v1399_v22 = vld [vmem:[#allocation5 + $0xc] sm:$0xf]  ;;  %v1168_v24 = vld [vmem:[#allocation8 + $0xf0] sm:$0xf]  ;;  %s995_s23 = sshll.u32 %s1699_s1, 4  ;;  %s996_s23 = int_to_ptr.vmem [resolvable:$true] %s995_s23 }
  0x23   :  { %v1038_v20 = vld [vmem:[#allocation5 + $0x38] sm:$0xf0]  ;;  %v1768_v25 = vpack.c.bf16 %v124_v18, %v124_v18  ;;  %v1160_v27 = vld [vmem:[#allocation8 + $0xe0] sm:$0xf]  ;;  %v1435_v28 = vld [vmem:[#allocation8 + $0xe4] sm:$0xf0] }
  0x24   :  { %v1041_v21 = vor.u32 %v1403_v19, %v1038_v20  ;;  %v1022_v23 = vld [vmem:[#allocation5 + $0x18] sm:$0xf0]  ;;  %195 = vmatpush.bf16.msra.mxu3 %v1013_v12  ;;  %v1104_v30 = vld [vmem:[#allocation8 + $0x70] sm:$0xf]  ;;  %v1161_v36 = vor.u32 %v1435_v28, %v1160_v27  ;;  %v1096_v38 = vld [vmem:[#allocation8 + $0x60] sm:$0xf] }
  0x25   :  { %v1437_v26 = vld [vmem:[#allocation8 + $0xf4] sm:$0xf0]  ;;  %v1232_v32 = vld [vmem:[#allocation8 + $0x170] sm:$0xf]  ;;  %208 = vmatpush.bf16.msra.mxu1 %v1017_v16  ;;  %v1025_v35 = vor.u32 %v1399_v22, %v1022_v23  ;;  %v1419_v39 = vld [vmem:[#allocation8 + $0x64] sm:$0xf0] }
  0x26   :  { %v1169_v29 = vor.u32 %v1437_v26, %v1168_v24  ;;  %v1421_v31 = vld [vmem:[#allocation8 + $0x74] sm:$0xf0]  ;;  %221 = vmatpush.bf16.msra.mxu2 %v1021_v17  ;;  %v1224_v40 = vld [vmem:[#allocation8 + $0x160] sm:$0xf]  ;;  %v1152_v41 = vld [vmem:[#allocation8 + $0xd0] sm:$0xf]  ;;  %v1097_v43 = vor.u32 %v1419_v39, %v1096_v38 }
  0x27   :  { %v1105_v33 = vor.u32 %v1421_v31, %v1104_v30  ;;  %v1453_v34 = vld [vmem:[#allocation8 + $0x174] sm:$0xf0]  ;;  %1042 = vmatmul.msk.bf16.vlgmr.msra.gmra.mxu3 %vm184_vm0, %v1768_v25  ;;  %v1451_v44 = vld [vmem:[#allocation8 + $0x164] sm:$0xf0]  ;;  %v1088_v45 = vld [vmem:[#allocation8 + $0x50] sm:$0xf] }
  0x28   :  { %233 = vmatpush.bf16.msrb.mxu3 %v1041_v21  ;;  %v1233_v37 = vor.u32 %v1453_v34, %v1232_v32  ;;  %v1433_v42 = vld [vmem:[#allocation8 + $0xd4] sm:$0xf0]  ;;  %1043 = vmatmul.msk.bf16.vlgmr.msra.gmra.mxu1 %vm184_vm0, %v1768_v25  ;;  %v1225_v47 = vor.u32 %v1451_v44, %v1224_v40  ;;  %v1216_v49 = vld [vmem:[#allocation8 + $0x150] sm:$0xf]  ;;  %v1144_v51 = vld [vmem:[#allocation8 + $0xc0] sm:$0xf] }
  0x29   :  { %651 = vmatpush.bf16.msrb.mxu1 %v1169_v29  ;;  %638 = vmatpush.bf16.msra.mxu0 %v1105_v33  ;;  %v1417_v46 = vld [vmem:[#allocation8 + $0x54] sm:$0xf0]  ;;  %v1153_v48 = vor.u32 %v1433_v42, %v1152_v41  ;;  %v1431_v52 = vld [vmem:[#allocation8 + $0xc4] sm:$0xf0]  ;;  %v1080_v54 = vld [vmem:[#allocation8 + $0x40] sm:$0xf] }
  0x2a   :  { %1044 = vmatmul.msk.bf16.vlgmr.msra.gmra.mxu2 %vm184_vm0, %v1768_v25  ;;  %v1449_v50 = vld [vmem:[#allocation8 + $0x154] sm:$0xf0]  ;;  %v1089_v53 = vor.u32 %v1417_v46, %v1088_v45  ;;  %v1415_v55 = vld [vmem:[#allocation8 + $0x44] sm:$0xf0]  ;;  %v1296_v57 = vld [vmem:[#allocation8 + $0x1f0] sm:$0xf]  ;;  %v1145_v59 = vor.u32 %v1431_v52, %v1144_v51 }
  0x2b   :  { %664 = vmatpush.bf16.msrb.mxu2 %v1233_v37  ;;  %v1217_v56 = vor.u32 %v1449_v50, %v1216_v49  ;;  %v1469_v58 = vld [vmem:[#allocation8 + $0x1f4] sm:$0xf0]  ;;  %v1208_v60 = vld [vmem:[#allocation8 + $0x140] sm:$0xf]  ;;  %v1447_v61 = vld [vmem:[#allocation8 + $0x144] sm:$0xf0]  ;;  %v1081_v1 = vor.u32 %v1415_v55, %v1080_v54 }
  0x2c   :  { %234 = vmatpush.bf16.msrb.mxu3 %v1025_v35  ;;  %v1297_v62 = vor.u32 %v1469_v58, %v1296_v57  ;;  %v1136_v63 = vld [vmem:[#allocation8 + $0xb0] sm:$0xf]  ;;  %v1429_v0 = vld [vmem:[#allocation8 + $0xb4] sm:$0xf0]  ;;  %v1288_v4 = vld [vmem:[#allocation8 + $0x1e0] sm:$0xf]  ;;  %v1209_v6 = vor.u32 %v1447_v61, %v1208_v60 }
  0x2d   :  { %652 = vmatpush.bf16.msrb.mxu1 %v1161_v36  ;;  %639 = vmatpush.bf16.msra.mxu0 %v1097_v43  ;;  %v1072_v2 = vld [vmem:[#allocation8 + $0x30] sm:$0xf]  ;;  %v1413_v3 = vld [vmem:[#allocation8 + $0x34] sm:$0xf0]  ;;  %v1467_v5 = vld [vmem:[#allocation8 + $0x1e4] sm:$0xf0]  ;;  %v1137_v8 = vor.u32 %v1429_v0, %v1136_v63 }
  0x2e   :  { %v1289_v7 = vor.u32 %v1467_v5, %v1288_v4  ;;  %v1128_v9 = vld [vmem:[#allocation8 + $0xa0] sm:$0xf]  ;;  %v1200_v10 = vld [vmem:[#allocation8 + $0x130] sm:$0xf]  ;;  %v1445_v11 = vld [vmem:[#allocation8 + $0x134] sm:$0xf0]  ;;  %v1073_v13 = vor.u32 %v1413_v3, %v1072_v2 }
  0x2f   :  { %665 = vmatpush.bf16.msrb.mxu2 %v1225_v47  ;;  %v1427_v12 = vld [vmem:[#allocation8 + $0xa4] sm:$0xf0]  ;;  %v1280_v14 = vld [vmem:[#allocation8 + $0x1d0] sm:$0xf]  ;;  %v1465_v15 = vld [vmem:[#allocation8 + $0x1d4] sm:$0xf0]  ;;  %v1201_v19 = vor.u32 %v1445_v11, %v1200_v10 }
  0x30   :  { %677 = vmatpush.bf16.msra.mxu3 %v1297_v62  ;;  %v1064_v16 = vld [vmem:[#allocation8 + $0x20] sm:$0xf]  ;;  %v1411_v17 = vld [vmem:[#allocation8 + $0x24] sm:$0xf0]  ;;  %v1281_v18 = vor.u32 %v1465_v15, %v1280_v14  ;;  %v1129_v21 = vor.u32 %v1427_v12, %v1128_v9  ;;  %v1120_v26 = vld [vmem:[#allocation8 + $0x90] sm:$0xf] }
  0x31   :  { %653 = vmatpush.bf16.msrb.mxu1 %v1153_v48  ;;  %640 = vmatpush.bf16.msra.mxu0 %v1089_v53  ;;  %v1192_v20 = vld [vmem:[#allocation8 + $0x120] sm:$0xf]  ;;  %v1443_v22 = vld [vmem:[#allocation8 + $0x124] sm:$0xf0]  ;;  %v1425_v27 = vld [vmem:[#allocation8 + $0x94] sm:$0xf0]  ;;  %v1065_v28 = vor.u32 %v1411_v17, %v1064_v16 }
  0x32   :  { %v1272_v23 = vld [vmem:[#allocation8 + $0x1c0] sm:$0xf]  ;;  %v1463_v24 = vld [vmem:[#allocation8 + $0x1c4] sm:$0xf0]  ;;  %v1056_v29 = vld [vmem:[#allocation8 + $0x10] sm:$0xf]  ;;  %v1193_v32 = vor.u32 %v1443_v22, %v1192_v20  ;;  %v1121_v33 = vor.u32 %v1425_v27, %v1120_v26 }
  0x33   :  { %666 = vmatpush.bf16.msrb.mxu2 %v1217_v56  ;;  %v1409_v30 = vld [vmem:[#allocation8 + $0x14] sm:$0xf0]  ;;  %v1273_v31 = vor.u32 %v1463_v24, %v1272_v23  ;;  %v1184_v34 = vld [vmem:[#allocation8 + $0x110] sm:$0xf]  ;;  %v1112_v36 = vld [vmem:[#allocation8 + $0x80] sm:$0xf] }
  0x34   :  { %678 = vmatpush.bf16.msra.mxu3 %v1289_v7  ;;  %v1441_v35 = vld [vmem:[#allocation8 + $0x114] sm:$0xf0]  ;;  %v1423_v37 = vld [vmem:[#allocation8 + $0x84] sm:$0xf0]  ;;  %v1436_v38 = vld [vmem:[#allocation8 + $0xf4] sm:$0xf]  ;;  %v1057_v39 = vor.u32 %v1409_v30, %v1056_v29 }
  0x35   :  { %654 = vmatpush.bf16.msrb.mxu1 %v1145_v59  ;;  %641 = vmatpush.bf16.msra.mxu0 %v1081_v1  ;;  %v1048_v40 = vld [vmem:[#allocation8] sm:$0xf]  ;;  %v1407_v41 = vld [vmem:[#allocation8 + $0x4] sm:$0xf0]  ;;  %v1185_v42 = vor.u32 %v1441_v35, %v1184_v34  ;;  %v1420_v43 = vld [vmem:[#allocation8 + $0x74] sm:$0xf]  ;;  %v1113_v45 = vor.u32 %v1423_v37, %v1112_v36 }
  0x36   :  { %v1106_v44 = vld [vmem:[#allocation8 + $0x78] sm:$0xf0]  ;;  %v1176_v46 = vld [vmem:[#allocation8 + $0x100] sm:$0xf]  ;;  %v1439_v47 = vld [vmem:[#allocation8 + $0x104] sm:$0xf0]  ;;  %v1049_v49 = vor.u32 %v1407_v41, %v1048_v40 }
  0x37   :  { %667 = vmatpush.bf16.msrb.mxu2 %v1209_v6  ;;  %1045 = vmatmul.msk.bf16.vlgmr.msrb.gmra.mxu3 %vm184_vm0, %v1768_v25  ;;  %v1170_v25 = vld [vmem:[#allocation8 + $0xf8] sm:$0xf0]  ;;  %v1452_v50 = vld [vmem:[#allocation8 + $0x174] sm:$0xf]  ;;  %v1434_v52 = vld [vmem:[#allocation8 + $0xe4] sm:$0xf]  ;;  %v1109_v54 = vor.u32 %v1420_v43, %v1106_v44  ;;  %v1177_v55 = vor.u32 %v1439_v47, %v1176_v46 }
  0x38   :  { %679 = vmatpush.bf16.msra.mxu3 %v1281_v18  ;;  %v1173_v48 = vor.u32 %v1436_v38, %v1170_v25  ;;  %v1234_v51 = vld [vmem:[#allocation8 + $0x178] sm:$0xf0]  ;;  %v1162_v53 = vld [vmem:[#allocation8 + $0xe8] sm:$0xf0]  ;;  %v1432_v58 = vld [vmem:[#allocation8 + $0xd4] sm:$0xf] }
  0x39   :  { %655 = vmatpush.bf16.msrb.mxu1 %v1137_v8  ;;  %642 = vmatpush.bf16.msra.mxu0 %v1073_v13  ;;  %v1237_v56 = vor.u32 %v1452_v50, %v1234_v51  ;;  %v1165_v57 = vor.u32 %v1434_v52, %v1162_v53  ;;  %v1154_v59 = vld [vmem:[#allocation8 + $0xd8] sm:$0xf0]  ;;  %v1264_v61 = vld [vmem:[#allocation8 + $0x1b0] sm:$0xf]  ;;  %v1461_v62 = vld [vmem:[#allocation8 + $0x1b4] sm:$0xf0] }
  0x3a   :  { %v1157_v60 = vor.u32 %v1432_v58, %v1154_v59  ;;  %v1265_v63 = vor.u32 %v1461_v62, %v1264_v61  ;;  %v1418_v0 = vld [vmem:[#allocation8 + $0x64] sm:$0xf]  ;;  %v1098_v1 = vld [vmem:[#allocation8 + $0x68] sm:$0xf0]  ;;  %v1256_v9 = vld [vmem:[#allocation8 + $0x1a0] sm:$0xf] }
  0x3b   :  { %668 = vmatpush.bf16.msrb.mxu2 %v1201_v19  ;;  %v1450_v2 = vld [vmem:[#allocation8 + $0x164] sm:$0xf]  ;;  %v1101_v3 = vor.u32 %v1418_v0, %v1098_v1  ;;  %v1226_v4 = vld [vmem:[#allocation8 + $0x168] sm:$0xf0]  ;;  %v1459_v10 = vld [vmem:[#allocation8 + $0x1a4] sm:$0xf0] }
  0x3c   :  { %680 = vmatpush.bf16.msra.mxu3 %v1273_v31  ;;  %v1229_v5 = vor.u32 %v1450_v2, %v1226_v4  ;;  %v1430_v6 = vld [vmem:[#allocation8 + $0xc4] sm:$0xf]  ;;  %v1146_v7 = vld [vmem:[#allocation8 + $0xc8] sm:$0xf0]  ;;  %v1257_v11 = vor.u32 %v1459_v10, %v1256_v9  ;;  %v1416_v12 = vld [vmem:[#allocation8 + $0x54] sm:$0xf] }
  0x3d   :  { %656 = vmatpush.bf16.msrb.mxu1 %v1129_v21  ;;  %643 = vmatpush.bf16.msra.mxu0 %v1065_v28  ;;  %v1149_v8 = vor.u32 %v1430_v6, %v1146_v7  ;;  %v1090_v13 = vld [vmem:[#allocation8 + $0x58] sm:$0xf0]  ;;  %v1448_v14 = vld [vmem:[#allocation8 + $0x154] sm:$0xf]  ;;  %v1248_v21 = vld [vmem:[#allocation8 + $0x190] sm:$0xf] }
  0x3e   :  { %v1093_v15 = vor.u32 %v1416_v12, %v1090_v13  ;;  %v1218_v16 = vld [vmem:[#allocation8 + $0x158] sm:$0xf0]  ;;  %v1428_v18 = vld [vmem:[#allocation8 + $0xb4] sm:$0xf]  ;;  %v1457_v22 = vld [vmem:[#allocation8 + $0x194] sm:$0xf0] }
  0x3f   :  { %669 = vmatpush.bf16.msrb.mxu2 %v1193_v32  ;;  %v1221_v17 = vor.u32 %v1448_v14, %v1218_v16  ;;  %v1138_v19 = vld [vmem:[#allocation8 + $0xb8] sm:$0xf0]  ;;  %v1249_v23 = vor.u32 %v1457_v22, %v1248_v21  ;;  %v1414_v24 = vld [vmem:[#allocation8 + $0x44] sm:$0xf]  ;;  %v1082_v26 = vld [vmem:[#allocation8 + $0x48] sm:$0xf0] }
  0x40   :  { %681 = vmatpush.bf16.msra.mxu3 %v1265_v63  ;;  %v1141_v20 = vor.u32 %v1428_v18, %v1138_v19  ;;  %v1446_v27 = vld [vmem:[#allocation8 + $0x144] sm:$0xf]  ;;  %v1085_v28 = vor.u32 %v1414_v24, %v1082_v26  ;;  %v1210_v29 = vld [vmem:[#allocation8 + $0x148] sm:$0xf0]  ;;  %v1240_v34 = vld [vmem:[#allocation8 + $0x180] sm:$0xf] }
  0x41   :  { %657 = vmatpush.bf16.msrb.mxu1 %v1121_v33  ;;  %644 = vmatpush.bf16.msra.mxu0 %v1057_v39  ;;  %v1213_v30 = vor.u32 %v1446_v27, %v1210_v29  ;;  %v1426_v31 = vld [vmem:[#allocation8 + $0xa4] sm:$0xf]  ;;  %v1130_v32 = vld [vmem:[#allocation8 + $0xa8] sm:$0xf0]  ;;  %v1455_v35 = vld [vmem:[#allocation8 + $0x184] sm:$0xf0] }
  0x42   :  { %v1133_v33 = vor.u32 %v1426_v31, %v1130_v32  ;;  %v1241_v36 = vor.u32 %v1455_v35, %v1240_v34  ;;  %v1412_v37 = vld [vmem:[#allocation8 + $0x34] sm:$0xf]  ;;  %v1074_v38 = vld [vmem:[#allocation8 + $0x38] sm:$0xf0]  ;;  %v1410_v47 = vld [vmem:[#allocation8 + $0x24] sm:$0xf] }
  0x43   :  { %670 = vmatpush.bf16.msrb.mxu2 %v1185_v42  ;;  %v1444_v39 = vld [vmem:[#allocation8 + $0x134] sm:$0xf]  ;;  %v1077_v25 = vor.u32 %v1412_v37, %v1074_v38  ;;  %v1202_v40 = vld [vmem:[#allocation8 + $0x138] sm:$0xf0]  ;;  %v1442_v50 = vld [vmem:[#allocation8 + $0x124] sm:$0xf] }
  0x44   :  { %682 = vmatpush.bf16.msra.mxu3 %v1257_v11  ;;  %v1468_v41 = vld [vmem:[#allocation8 + $0x1f4] sm:$0xf]  ;;  %v1298_v42 = vld [vmem:[#allocation8 + $0x1f8] sm:$0xf0]  ;;  %v1205_v43 = vor.u32 %v1444_v39, %v1202_v40  ;;  %v1194_v51 = vld [vmem:[#allocation8 + $0x128] sm:$0xf0] }
  0x45   :  { %658 = vmatpush.bf16.msrb.mxu1 %v1113_v45  ;;  %645 = vmatpush.bf16.msra.mxu0 %v1049_v49  ;;  %v1301_v44 = vor.u32 %v1468_v41, %v1298_v42  ;;  %v1424_v45 = vld [vmem:[#allocation8 + $0x94] sm:$0xf]  ;;  %v1122_v46 = vld [vmem:[#allocation8 + $0x98] sm:$0xf0]  ;;  %v1066_v49 = vld [vmem:[#allocation8 + $0x28] sm:$0xf0]  ;;  %v1197_v53 = vor.u32 %v1442_v50, %v1194_v51 }
  0x46   :  { %v1069_v52 = vor.u32 %v1410_v47, %v1066_v49  ;;  %v1114_v58 = vld [vmem:[#allocation8 + $0x88] sm:$0xf0]  ;;  %v1058_v61 = vld [vmem:[#allocation8 + $0x18] sm:$0xf0]  ;;  %v1440_v62 = vld [vmem:[#allocation8 + $0x114] sm:$0xf] }
  0x47   :  { %671 = vmatpush.bf16.msrb.mxu2 %v1177_v55  ;;  %v1290_v55 = vld [vmem:[#allocation8 + $0x1e8] sm:$0xf0]  ;;  %v1186_v0 = vld [vmem:[#allocation8 + $0x118] sm:$0xf0]  ;;  %v1464_v1 = vld [vmem:[#allocation8 + $0x1d4] sm:$0xf] }
  0x48   :  { %683 = vmatpush.bf16.msra.mxu3 %v1249_v23  ;;  %v1282_v2 = vld [vmem:[#allocation8 + $0x1d8] sm:$0xf0]  ;;  %v1050_v6 = vld [vmem:[#allocation8 + $0x8] sm:$0xf0]  ;;  %v1438_v7 = vld [vmem:[#allocation8 + $0x104] sm:$0xf] }
  0x49   :  { %703 = vmatpush.bf16.msra.mxu1 %v1173_v48  ;;  %690 = vmatpush.bf16.msrb.mxu0 %v1109_v54  ;;  %v1125_v48 = vor.u32 %v1424_v45, %v1122_v46  ;;  %v1466_v54 = vld [vmem:[#allocation8 + $0x1e4] sm:$0xf]  ;;  %v1285_v4 = vor.u32 %v1464_v1, %v1282_v2  ;;  %v1178_v9 = vld [vmem:[#allocation8 + $0x108] sm:$0xf0]  ;;  %v134_v14 = vld [vmem:[#allocation7] sm:$0xf] }
  0x4a   :  { %v1462_v10 = vld [vmem:[#allocation8 + $0x1c4] sm:$0xf]  ;;  %v1274_v11 = vld [vmem:[#allocation8 + $0x1c8] sm:$0xf0]  ;;  %v1181_v12 = vor.u32 %v1438_v7, %v1178_v9  ;;  %v1266_v16 = vld [vmem:[#allocation8 + $0x1b8] sm:$0xf0] }
  0x4b   :  { %716 = vmatpush.bf16.msra.mxu2 %v1237_v56  ;;  %v1422_v56 = vld [vmem:[#allocation8 + $0x84] sm:$0xf]  ;;  %v1277_v13 = vor.u32 %v1462_v10, %v1274_v11  ;;  %v137_v18 = vperm.slane %v134_v14, 1  ;;  %v1456_v23 = vld [vmem:[#allocation8 + $0x194] sm:$0xf]  ;;  %v136_v27 = vperm.slane %v134_v14, 0 }
  0x4c   :  { %684 = vmatpush.bf16.msra.mxu3 %v1241_v36  ;;  %v1117_v59 = vor.u32 %v1422_v56, %v1114_v58  ;;  %v1458_v19 = vld [vmem:[#allocation8 + $0x1a4] sm:$0xf]  ;;  %v1250_v24 = vld [vmem:[#allocation8 + $0x198] sm:$0xf0]  ;;  %v138_v29 = vperm.slane %v134_v14, 2  ;;  %v139_v45 = vperm.slane %v134_v14, 3 }
  0x4d   :  { %704 = vmatpush.bf16.msra.mxu1 %v1165_v57  ;;  %691 = vmatpush.bf16.msrb.mxu0 %v1101_v3  ;;  %v1293_v57 = vor.u32 %v1466_v54, %v1290_v55  ;;  %v1189_v3 = vor.u32 %v1440_v62, %v1186_v0  ;;  %v1454_v31 = vld [vmem:[#allocation8 + $0x184] sm:$0xf]  ;;  %v1242_v32 = vld [vmem:[#allocation8 + $0x188] sm:$0xf0]  ;;  %v1477_v51 = vld [vmem:[#allocation10 + $0x38] sm:$0xff]  ;;  %s997_s26 = sshll.u32 %s1799_s9, 4  ;;  %s998_s26 = int_to_ptr.hbm [resolvable:$true] %s997_s26 }
  0x4e   :  { %v1245_v38 = vor.u32 %v1454_v31, %v1242_v32  ;;  %v1474_v54 = vld [vmem:[#allocation10 + $0x20] sm:$0xff]  ;;  %v1473_v55 = vld [vmem:[#allocation10 + $0x18] sm:$0xff]  ;;  %v1484_v58 = vld [vmem:[#allocation10 + $0x70] sm:$0xff] }
  0x4f   :  { %717 = vmatpush.bf16.msra.mxu2 %v1229_v5  ;;  %v1406_v5 = vld [vmem:[#allocation8 + $0x4] sm:$0xf]  ;;  %v1485_v56 = vld [vmem:[#allocation10 + $0x78] sm:$0xff]  ;;  %v1480_v1 = vld [vmem:[#allocation10 + $0x50] sm:$0xff] }
  0x50   :  { %729 = vmatpush.bf16.msrb.mxu3 %v1301_v44  ;;  %v1482_v62 = vld [vmem:[#allocation10 + $0x60] sm:$0xff]  ;;  %v1481_v0 = vld [vmem:[#allocation10 + $0x58] sm:$0xff] }
  0x51   :  { %705 = vmatpush.bf16.msra.mxu1 %v1157_v60  ;;  %692 = vmatpush.bf16.msrb.mxu0 %v1093_v15  ;;  %v1408_v60 = vld [vmem:[#allocation8 + $0x14] sm:$0xf]  ;;  %v1493_v11 = vld [vmem:[#allocation11 + $0x38] sm:$0xff] }
  0x52   :  { %v1061_v63 = vor.u32 %v1408_v60, %v1058_v61  ;;  %v1460_v15 = vld [vmem:[#allocation8 + $0x1b4] sm:$0xf]  ;;  %v1483_v60 = vld [vmem:[#allocation10 + $0x68] sm:$0xff]  ;;  %v1470_v61 = vld [vmem:[#allocation10] sm:$0xff] }
  0x53   :  { %718 = vmatpush.bf16.msra.mxu2 %v1221_v17  ;;  %v1269_v17 = vor.u32 %v1460_v15, %v1266_v16  ;;  %v1492_v15 = vld [vmem:[#allocation11 + $0x30] sm:$0xff] }
  0x54   :  { %730 = vmatpush.bf16.msrb.mxu3 %v1293_v57  ;;  %v1472_v57 = vld [vmem:[#allocation10 + $0x10] sm:$0xff] }
  0x55   :  { %706 = vmatpush.bf16.msra.mxu1 %v1149_v8  ;;  %693 = vmatpush.bf16.msrb.mxu0 %v1085_v28  ;;  %v1053_v8 = vor.u32 %v1406_v5, %v1050_v6  ;;  %v312_v6 = vld [vmem:[%s1794_s4] sm:$0x3] }
  0x56   :  { %v314_v9 = vperm.slane %v312_v6, 0 }
  0x57   :  { %719 = vmatpush.bf16.msra.mxu2 %v1213_v30  ;;  %v1253_v30 = vor.u32 %v1456_v23, %v1250_v24  ;;  %v315_v24 = vperm.slane %v312_v6, 1 }
  0x58   :  { %731 = vmatpush.bf16.msrb.mxu3 %v1285_v4  ;;  %v1479_v4 = vld [vmem:[#allocation10 + $0x48] sm:$0xff] }
  0x59   :  { %707 = vmatpush.bf16.msra.mxu1 %v1141_v20  ;;  %694 = vmatpush.bf16.msrb.mxu0 %v1077_v25  ;;  %v1258_v20 = vld [vmem:[#allocation8 + $0x1a8] sm:$0xf0] }
  0x5a   :  { %v1261_v21 = vor.u32 %v1458_v19, %v1258_v20 }
  0x5b   :  { %720 = vmatpush.bf16.msra.mxu2 %v1205_v43 }
  0x5c   :  { %732 = vmatpush.bf16.msrb.mxu3 %v1277_v13 }
  0x5d   :  { %708 = vmatpush.bf16.msra.mxu1 %v1133_v33  ;;  %695 = vmatpush.bf16.msrb.mxu0 %v1069_v52  ;;  %v1476_v52 = vld [vmem:[#allocation10 + $0x30] sm:$0xff] }
  0x5f   :  { %721 = vmatpush.bf16.msra.mxu2 %v1197_v53  ;;  %v1475_v53 = vld [vmem:[#allocation10 + $0x28] sm:$0xff] }
  0x60   :  { %733 = vmatpush.bf16.msrb.mxu3 %v1269_v17 }
  0x61   :  { %709 = vmatpush.bf16.msra.mxu1 %v1125_v48  ;;  %696 = vmatpush.bf16.msrb.mxu0 %v1061_v63 }
  0x63   :  { %722 = vmatpush.bf16.msra.mxu2 %v1189_v3 }
  0x64   :  { %734 = vmatpush.bf16.msrb.mxu3 %v1261_v21 }
  0x65   :  { %710 = vmatpush.bf16.msra.mxu1 %v1117_v59  ;;  %697 = vmatpush.bf16.msrb.mxu0 %v1053_v8  ;;  %v1471_v59 = vld [vmem:[#allocation10 + $0x8] sm:$0xff]  ;;  %v1478_v8 = vld [vmem:[#allocation10 + $0x40] sm:$0xff] }
  0x67   :  { %723 = vmatpush.bf16.msra.mxu2 %v1181_v12 }
  0x68   :  { %735 = vmatpush.bf16.msrb.mxu3 %v1253_v30 }
  0x6c   :  { %736 = vmatpush.bf16.msrb.mxu3 %v1245_v38  ;;  %v1490_v38 = vld [vmem:[#allocation11 + $0x20] sm:$0xff] }
  0xa5   :  { %v210_v22 = vpop.f32.mrf.mxu1 }
  0xa6   :  { %v211_v26 = vadd.f32 %v210_v22, %v137_v18 }
  0xa8   :  { %v241_v28 = vmax.f32 %v211_v26, 0.0 }
  0xaa   :  { %v245_v33 = vpack.c.bf16 %v241_v28, %v241_v28  ;;  %v197_v34 = vpop.f32.mrf.mxu3 }
  0xab   :  { %v198_v35 = vadd.f32 %v197_v34, %v136_v27 }
  0xac   :  { %659 = vmatmul.bf16.vlgmr.msrb.gmra.mxu1 %v245_v33 }
  0xad   :  { %v223_v36 = vpop.f32.mrf.mxu2  ;;  %v240_v39 = vmax.f32 %v198_v35, 0.0  ;;  %v212_v25 = vpop.f32.mrf.mxu1  ;;  %891 = vmatpush.bf16.msrb.mxu1 %v1485_v56 }
  0xae   :  { %v224_v37 = vadd.f32 %v223_v36, %v138_v29  ;;  %v1488_v25 = vld [vmem:[#allocation11 + $0x10] sm:$0xff] }
  0xaf   :  { %v244_v41 = vpack.c.bf16 %v240_v39, %v240_v39  ;;  %v1489_v39 = vld [vmem:[#allocation11 + $0x18] sm:$0xff] }
  0xb0   :  { %v242_v40 = vmax.f32 %v224_v37, 0.0  ;;  %v1491_v37 = vld [vmem:[#allocation11 + $0x28] sm:$0xff] }
  0xb1   :  { %646 = vmatmul.bf16.vlgmr.msra.gmra.mxu0 %v244_v41  ;;  %892 = vmatpush.bf16.msrb.mxu1 %v1484_v58 }
  0xb2   :  { %v246_v42 = vpack.c.bf16 %v242_v40, %v242_v40  ;;  %v199_v43 = vpop.f32.mrf.mxu3  ;;  %878 = vmatpush.bf16.msra.mxu0 %v1477_v51  ;;  %v1487_v40 = vld [vmem:[#allocation11 + $0x8] sm:$0xff]  ;;  %v1508_v51 = vld [vmem:[%s1798_s8] ss:$0 sm:$0xff] }
  0xb4   :  { %672 = vmatmul.bf16.vlgmr.msrb.gmra.mxu2 %v246_v42 }
  0xb5   :  { %v225_v44 = vpop.f32.mrf.mxu2  ;;  %893 = vmatpush.bf16.msrb.mxu1 %v1483_v60  ;;  %974 = vmatpush.bf16.msrb.mxu2 %v1493_v11 }
  0xb6   :  { %879 = vmatpush.bf16.msra.mxu0 %v1476_v52  ;;  %v1507_v44 = vld [vmem:[%s1796_s6] ss:$0 sm:$0xff] }
  0xb9   :  { %894 = vmatpush.bf16.msrb.mxu1 %v1482_v62  ;;  %975 = vmatpush.bf16.msrb.mxu2 %v1492_v15 }
  0xba   :  { %v236_v46 = vpop.f32.mrf.mxu3  ;;  %880 = vmatpush.bf16.msra.mxu0 %v1475_v53 }
  0xbb   :  { %v237_v47 = vadd.f32 %v236_v46, %v139_v45 }
  0xbc   :  { %711 = vmatmul.bf16.vlgmr.msra.gmra.mxu1 %v245_v33 }
  0xbd   :  { %v243_v48 = vmax.f32 %v237_v47, 0.0  ;;  %895 = vmatpush.bf16.msrb.mxu1 %v1481_v0  ;;  %976 = vmatpush.bf16.msrb.mxu2 %v1491_v37 }
  0xbe   :  { %881 = vmatpush.bf16.msra.mxu0 %v1474_v54 }
  0xbf   :  { %v247_v49 = vpack.c.bf16 %v243_v48, %v243_v48 }
  0xc1   :  { %685 = vmatmul.bf16.vlgmr.msra.gmra.mxu3 %v247_v49  ;;  %698 = vmatmul.bf16.vlgmr.msrb.gmra.mxu0 %v244_v41  ;;  %v1486_v41 = vld [vmem:[#allocation11] sm:$0xff] }
  0xc2   :  { %v238_v50 = vpop.f32.mrf.mxu3  ;;  %882 = vmatpush.bf16.msra.mxu0 %v1473_v55  ;;  %896 = vmatpush.bf16.msrb.mxu1 %v1480_v1 }
  0xc3   :  { %977 = vmatpush.bf16.msrb.mxu2 %v1490_v38 }
  0xc4   :  { %724 = vmatmul.bf16.vlgmr.msra.gmra.mxu2 %v246_v42 }
  0xc6   :  { %883 = vmatpush.bf16.msra.mxu0 %v1472_v57  ;;  %897 = vmatpush.bf16.msrb.mxu1 %v1479_v4 }
  0xc7   :  { %978 = vmatpush.bf16.msrb.mxu2 %v1489_v39 }
  0xca   :  { %884 = vmatpush.bf16.msra.mxu0 %v1471_v59  ;;  %898 = vmatpush.bf16.msrb.mxu1 %v1478_v8 }
  0xcb   :  { %979 = vmatpush.bf16.msrb.mxu2 %v1488_v25 }
  0xce   :  { %885 = vmatpush.bf16.msra.mxu0 %v1470_v61 }
  0xcf   :  { %980 = vmatpush.bf16.msrb.mxu2 %v1487_v40 }
  0xd1   :  { %737 = vmatmul.bf16.vlgmr.msrb.gmra.mxu3 %v247_v49 }
  0xd3   :  { %981 = vmatpush.bf16.msrb.mxu2 %v1486_v41 }
 0x129   :  { %v660_v63 = vpop.f32.mrf.mxu1 }
 0x12e   :  { %v647_v2 = vpop.f32.mrf.mxu0 }
 0x12f   :  { %v648_v12 = vadd.f32 %v647_v2, %v314_v9 }
 0x131   :  { %v662_v3 = vpop.f32.mrf.mxu1  ;;  %v661_v16 = vadd.f32 %v660_v63, %v648_v12 }
 0x136   :  { %v649_v7 = vpop.f32.mrf.mxu0 }
 0x137   :  { %v673_v5 = vpop.f32.mrf.mxu2 }
 0x138   :  { %v674_v18 = vadd.f32 %v673_v5, %v661_v16 }
 0x139   :  { %v712_v10 = vpop.f32.mrf.mxu1 }
 0x13e   :  { %v699_v14 = vpop.f32.mrf.mxu0 }
 0x13f   :  { %v675_v13 = vpop.f32.mrf.mxu2  ;;  %v700_v28 = vadd.f32 %v699_v14, %v315_v24 }
 0x141   :  { %v714_v17 = vpop.f32.mrf.mxu1  ;;  %v713_v30 = vadd.f32 %v712_v10, %v700_v28 }
 0x144   :  { %v686_v19 = vpop.f32.mrf.mxu3 }
 0x145   :  { %v687_v20 = vadd.f32 %v686_v19, %v674_v18 }
 0x146   :  { %v701_v22 = vpop.f32.mrf.mxu0 }
 0x147   :  { %v725_v21 = vpop.f32.mrf.mxu2  ;;  %v742_v23 = vmax.f32 %v687_v20, 0.0 }
 0x148   :  { %v726_v31 = vadd.f32 %v725_v21, %v713_v30 }
 0x149   :  { %v744_v26 = vpack.c.bf16 %v742_v23, %v742_v23 }
 0x14b   :  { %886 = vmatmul.bf16.vlgmr.msra.gmra.mxu0 %v744_v26 }
 0x14c   :  { %v688_v27 = vpop.f32.mrf.mxu3 }
 0x14f   :  { %v727_v29 = vpop.f32.mrf.mxu2 }
 0x154   :  { %v738_v32 = vpop.f32.mrf.mxu3 }
 0x155   :  { %v739_v33 = vadd.f32 %v738_v32, %v726_v31 }
 0x157   :  { %v743_v34 = vmax.f32 %v739_v33, 0.0 }
 0x159   :  { %v745_v35 = vpack.c.bf16 %v743_v34, %v743_v34 }
 0x15b   :  { %899 = vmatmul.bf16.vlgmr.msrb.gmra.mxu1 %v745_v35 }
 0x15c   :  { %v740_v36 = vpop.f32.mrf.mxu3 }
 0x1c8   :  { %v887_v42 = vpop.f32.mrf.mxu0 }
 0x1c9   :  { %v888_v45 = vadd.f32 %v1507_v44, %v887_v42 }
 0x1d0   :  { %v889_v43 = vpop.f32.mrf.mxu0 }
 0x1d8   :  { %v900_v46 = vpop.f32.mrf.mxu1 }
 0x1d9   :  { %v901_v47 = vadd.f32 %v900_v46, %v888_v45 }
 0x1db   :  { %v904_v48 = vmax.f32 %v901_v47, 0.0 }
 0x1dd   :  { %v905_v49 = vpack.c.bf16 %v904_v48, %v904_v48 }
 0x1df   :  { %982 = vmatmul.bf16.vlgmr.msrb.gmra.mxu2 %v905_v49 }
 0x1e0   :  { %v902_v50 = vpop.f32.mrf.mxu1 }
 0x262   :  { %v983_v52 = vpop.f32.mrf.mxu2 }
 0x263   :  { %v984_v53 = vadd.f32 %v1508_v51, %v983_v52 }
 0x265   :  { %v987_v54 = vmax.f32 %v984_v53, 0.0 }
 0x267   :  { %v988_v55 = vpack.c.bf16 %v987_v54, %v987_v54 }
 0x269   :  { %989 = vst [vmem:[#allocation13] sm:$0xf] %v988_v55 }
 0x26a   :  { %v985_v56 = vpop.f32.mrf.mxu2  ;;  %1000 = dma.vmem_to_hbm [thread:$0]  %s996_s23, 64, %s998_s26, [#allocation4]  }
 0x26b   :  { %1685 = dma.done.wait [#allocation4], 64  }
 0x26c   :  { %1686 = vsyncadd [#allocation4], 4294967232 }
 0x26d   :  { %1005 = vsyncpa [#allocation3], 1 }
 0x26e   :  { %1006 = vsyncpa [#allocation6], 1 }
 0x26f   :  { %1007 = vsyncpa [#allocation9], 1 }
 0x270   :  { %1008 = vsyncpa [#allocation12], 1 }
 0x271   :  { %1009 = vsyncpa [#allocation4], 1 }

</bundles_post_ra>
